<compile_context>
chip_gen: v7x
topology: tpu7x:2x2x1
jax: 0.10.0
libtpu: 0.0.40
codegen_flags: <defaults>
</compile_context>

<pallas_src>
import functools
import math

import jax
import jax.numpy as jnp
from jax import lax
from jax.experimental import pallas as pl
from jax.experimental.pallas import tpu as pltpu


def _round_up(x, m):
    return (x + m - 1) // m * m


def _embed_kernel(T, unroll,
                  sub_ids_ref,              # (n_pad,) int32 -- scalar prefetch (SMEM)
                  m1_ids_ref, m2_ids_ref,   # (T, 1) int32   -- m2 pre-offset by +48
                  sub_hbm_ref,              # (Vp, Hp)       -- raw HBM ref (pl.ANY)
                  pos_tbl_ref,              # (64, Hp)       -- fused pos table (VMEM)
                  o_ref,                    # (T, Hp)        -- output block
                  gather_buf,               # (2, T, Hp) VMEM double-buffered gather
                  sem):                     # DMA semaphores, shape (2,)
    blk = pl.program_id(0)
    nblk = pl.num_programs(0)
    slot = blk % 2

    def issue(block_idx, s):
        base = block_idx * T

        @pl.loop(0, T // unroll)
        def _(c):
            i0 = pl.multiple_of(c * unroll, unroll)
            for u in range(unroll):   # static unroll: descriptors back-to-back
                row = sub_ids_ref[base + i0 + u]
                pltpu.make_async_copy(sub_hbm_ref.at[row],
                                      gather_buf.at[s, i0 + u],
                                      sem.at[s]).start()

    # Prime the pipeline: the first grid step issues its own row gathers.
    @pl.when(blk == 0)
    def _():
        issue(0, 0)

    # Issue the NEXT block's gathers into the other slot so their HBM latency
    # hides behind this block's compute / wait / store.
    @pl.when(blk + 1 < nblk)
    def _():
        issue(blk + 1, 1 - slot)

    # Positional embeddings while the gather DMAs are in flight: one fused
    # "two-hot" selection matmul on the MXU (m1 rows live at [0,47),
    # m2 rows at [48,59) of the fused table).
    iota = lax.broadcasted_iota(jnp.int32, (T, 64), 1)
    sel = ((iota == m1_ids_ref[...]) |
           (iota == m2_ids_ref[...])).astype(pos_tbl_ref.dtype)
    pos_emb = jnp.dot(sel, pos_tbl_ref[...], preferred_element_type=jnp.float32)

    # One aggregate wait for this block's T equal-size row copies: the wait
    # descriptor's byte count (T * Hp * itemsize) matches the total signaled by
    # the T row DMAs on sem[slot].
    pltpu.make_async_copy(sub_hbm_ref.at[pl.ds(0, T)],
                          gather_buf.at[slot],
                          sem.at[slot]).wait()

    o_ref[...] = (gather_buf[slot].astype(jnp.float32) + pos_emb).astype(o_ref.dtype)


def subword_embedding(input_ids, position_ids, sub_tbl, m1_tbl, m2_tbl,
                      *, tokens_per_block=256):
    """input_ids, position_ids: (B, S) ints.  Tables: (V, H), (47, H), (11, H)."""
    B, S = input_ids.shape
    V, H = sub_tbl.shape
    n = B * S
    dt = sub_tbl.dtype

    # Lane-pad H so every gathered row DMA and output store is lane-dense.
    Hp = _round_up(H, 128)
    if Hp != H:
        sub_tbl = jnp.pad(sub_tbl, ((0, 0), (0, Hp - H)))
        m1_tbl = jnp.pad(m1_tbl, ((0, 0), (0, Hp - H)))
        m2_tbl = jnp.pad(m2_tbl, ((0, 0), (0, Hp - H)))

    # Token blocking: T tokens per grid step (multiple of 8 for sublane align).
    T = min(tokens_per_block, _round_up(n, 8))
    unroll = math.gcd(8, T)
    n_pad = _round_up(n, T)
    pad = n_pad - n

    # torch.fmod == integer remainder for the non-negative position ids this
    # module receives.  m2 ids are pre-offset into the fused (64, Hp) table.
    sub_ids = input_ids.reshape(n).astype(jnp.int32)
    pos = position_ids.reshape(n).astype(jnp.int32)
    m1_ids = pos % 47
    m2_ids = pos % 11 + 48
    if pad:
        sub_ids = jnp.pad(sub_ids, (0, pad))       # padded tokens gather row 0
        m1_ids = jnp.pad(m1_ids, (0, pad))
        m2_ids = jnp.pad(m2_ids, (0, pad))
    m1_ids2 = m1_ids.reshape(n_pad, 1)
    m2_ids2 = m2_ids.reshape(n_pad, 1)

    # Fused positional table: rows [0,48) = m1 (47 + 1 zero pad),
    # rows [48,64) = m2 (11 + 5 zero pad).  One VMEM-resident 64-row block.
    pos_tbl = jnp.concatenate(
        [jnp.pad(m1_tbl, ((0, 1), (0, 0))), jnp.pad(m2_tbl, ((0, 5), (0, 0)))],
        axis=0)

    # The aggregate-wait descriptor spans T rows of the HBM table; pad (toy)
    # vocabularies so the descriptor is always in-bounds.
    if V < T:
        sub_tbl = jnp.pad(sub_tbl, ((0, T - V), (0, 0)))

    grid = (n_pad // T,)
    kernel = functools.partial(_embed_kernel, T, unroll)

    grid_spec = pltpu.PrefetchScalarGridSpec(
        num_scalar_prefetch=1,
        grid=grid,
        in_specs=[
            pl.BlockSpec((T, 1), lambda b, sids: (b, 0)),     # m1 ids (VMEM)
            pl.BlockSpec((T, 1), lambda b, sids: (b, 0)),     # m2 ids (VMEM)
            pl.BlockSpec(memory_space=pl.ANY),                # subword table (HBM)
            pl.BlockSpec((64, Hp), lambda b, sids: (0, 0)),   # fused pos table
        ],
        out_specs=pl.BlockSpec((T, Hp), lambda b, sids: (b, 0)),
        scratch_shapes=[
            pltpu.VMEM((2, T, Hp), dt),          # double-buffered gather scratch
            pltpu.SemaphoreType.DMA((2,)),       # per-slot DMA semaphores
        ],
    )

    out = pl.pallas_call(
        kernel,
        out_shape=jax.ShapeDtypeStruct((n_pad, Hp), dt),
        grid_spec=grid_spec,
        # "arbitrary": the cross-step DMA double-buffer carries state between
        # grid steps, so iteration must stay sequential on one core.
        compiler_params=pltpu.CompilerParams(
            dimension_semantics=("arbitrary",)),
    )(sub_ids, m1_ids2, m2_ids2, sub_tbl, pos_tbl)

    return out[:n, :H].reshape(B, S, H)


if __name__ == "__main__":
    # Small synthetic config: vocab_size=64, num_embed_hidden=128, batch=2, seq=8.
    VOCAB, HIDDEN, B, S = 64, 128, 2, 8

    key = jax.random.PRNGKey(0)
    k_sub, k_m1, k_m2, k_ids = jax.random.split(key, 4)

    sub_tbl = (0.02 * jax.random.normal(k_sub, (VOCAB, HIDDEN))).astype(jnp.float32)
    m1_tbl = (0.02 * jax.random.normal(k_m1, (47, HIDDEN))).astype(jnp.float32)
    m2_tbl = (0.02 * jax.random.normal(k_m2, (11, HIDDEN))).astype(jnp.float32)

    input_ids = jax.random.randint(k_ids, (B, S), 0, VOCAB, dtype=jnp.int32)
    position_ids = jnp.broadcast_to(jnp.arange(S, dtype=jnp.int32)[None, :], (B, S))

    out = subword_embedding(input_ids, position_ids, sub_tbl, m1_tbl, m2_tbl)
    out = jax.block_until_ready(out)

    # Pure-JAX reference (embedding gathers + sum); % == fmod for non-negative ids.
    ref = (sub_tbl[input_ids]
           + m1_tbl[position_ids % 47]
           + m2_tbl[position_ids % 11])
    assert out.shape == (B, S, HIDDEN)
    assert jnp.allclose(out, ref, atol=1e-6), "mismatch vs reference"

    print("KERNEL_OK")
</pallas_src>

<mosaic_0001>
module attributes {stable_mosaic.version = 11 : i64} {
  func.func @_embed_kernel(%arg0: i32, %arg1: memref<16xi32, #tpu.memory_space<smem>>, %arg2: memref<16x1xi32, #tpu.memory_space<vmem>>, %arg3: memref<16x1xi32, #tpu.memory_space<vmem>>, %arg4: memref<64x128xf32, #tpu.memory_space<any>>, %arg5: memref<64x128xf32, #tpu.memory_space<vmem>>, %arg6: memref<16x128xf32, #tpu.memory_space<vmem>>, %arg7: memref<2x16x128xf32, #tpu.memory_space<vmem>>, %arg8: memref<2x!tpu.dma_semaphore, #tpu.memory_space<semaphore_mem>>) attributes {dimension_semantics = [#tpu.dimension_semantics<arbitrary>], iteration_bounds = array<i64: 1>, scalar_prefetch = 1 : i64, scratch_operands = 2 : i64, tpu.core_type = #tpu.core_type<tc>, window_params = [{transform_indices = @transform_0, window_bounds = array<i64: 16, 1>}, {transform_indices = @transform_1, window_bounds = array<i64: 16, 1>}, {}, {pipeline_mode = #tpu.pipeline_mode<synchronous>, transform_indices = @transform_3, window_bounds = array<i64: 64, 128>}, {transform_indices = @transform_4, window_bounds = array<i64: 16, 128>}]} {
    %c2_i32 = arith.constant 2 : i32
    %c0_i32 = arith.constant 0 : i32
    %0 = arith.cmpi eq, %c2_i32, %c0_i32 : i32
    %c1_i32 = arith.constant 1 : i32
    %1 = arith.select %0, %c1_i32, %c2_i32 : i32
    %2 = arith.remsi %arg0, %1 : i32
    %c0_i32_0 = arith.constant 0 : i32
    %3 = arith.cmpi ne, %2, %c0_i32_0 : i32
    %c0_i32_1 = arith.constant 0 : i32
    %4 = arith.cmpi slt, %2, %c0_i32_1 : i32
    %c0_i32_2 = arith.constant 0 : i32
    %5 = arith.cmpi slt, %1, %c0_i32_2 : i32
    %6 = arith.xori %4, %5 : i1
    %7 = arith.andi %6, %3 : i1
    %8 = arith.addi %2, %1 : i32
    %9 = arith.select %7, %8, %2 : i32
    %c0_i32_3 = arith.constant 0 : i32
    %10 = arith.cmpi eq, %arg0, %c0_i32_3 : i32
    %11 = arith.extui %10 : i1 to i32
    %c0_i32_4 = arith.constant 0 : i32
    %12 = arith.cmpi ne, %11, %c0_i32_4 : i32
    scf.if %12 {
      %c0_i32_21 = arith.constant 0 : i32
      %c2_i32_22 = arith.constant 2 : i32
      %39 = arith.addi %c0_i32_21, %c2_i32_22 : i32
      %c1_i32_23 = arith.constant 1 : i32
      scf.for %arg9 = %c0_i32_21 to %39 step %c1_i32_23  : i32 {
        %c1_i32_25 = arith.constant 1 : i32
        %40 = arith.muli %arg9, %c1_i32_25 : i32
        %c0_i32_26 = arith.constant 0 : i32
        %41 = arith.addi %c0_i32_26, %40 : i32
        %c8_i32 = arith.constant 8 : i32
        %42 = arith.muli %41, %c8_i32 : i32
        %43 = tpu.assume_multiple %42, 8 : i32
        %c0_i32_27 = arith.constant 0 : i32
        %44 = arith.addi %c0_i32_27, %43 : i32
        %c0_i32_28 = arith.constant 0 : i32
        %45 = arith.addi %44, %c0_i32_28 : i32
        %46 = arith.index_cast %45 : i32 to index
        %47 = memref.load %arg1[%46] : memref<16xi32, #tpu.memory_space<smem>>
        %c0_i32_29 = arith.constant 0 : i32
        %48 = arith.addi %43, %c0_i32_29 : i32
        %c0_i32_30 = arith.constant 0 : i32
        %c0_i32_31 = arith.constant 0 : i32
        %c0_i32_32 = arith.constant 0 : i32
        %49 = tpu.memref_slice %arg4[%47, %c0_i32_32] : memref<64x128xf32, #tpu.memory_space<any>> -> memref<1x128xf32, #tpu.memory_space<any>>
        %50 = tpu.memref_squeeze %49 : memref<1x128xf32, #tpu.memory_space<any>> -> memref<128xf32, #tpu.memory_space<any>>
        %c0_i32_33 = arith.constant 0 : i32
        %51 = tpu.memref_slice %arg7[%c0_i32_30, %48, %c0_i32_33] : memref<2x16x128xf32, #tpu.memory_space<vmem>> -> memref<1x1x128xf32, #tpu.memory_space<vmem>>
        %52 = tpu.memref_squeeze %51 : memref<1x1x128xf32, #tpu.memory_space<vmem>> -> memref<128xf32, #tpu.memory_space<vmem>>
        %53 = tpu.memref_slice %arg8[%c0_i32_31] : memref<2x!tpu.dma_semaphore, #tpu.memory_space<semaphore_mem>> -> memref<1x!tpu.dma_semaphore, #tpu.memory_space<semaphore_mem>>
        %54 = tpu.memref_squeeze %53 : memref<1x!tpu.dma_semaphore, #tpu.memory_space<semaphore_mem>> -> memref<!tpu.dma_semaphore, #tpu.memory_space<semaphore_mem>>
        tpu.enqueue_dma source(%50 : memref<128xf32, #tpu.memory_space<any>>) target(%52 : memref<128xf32, #tpu.memory_space<vmem>>) target_semaphore(%54 : memref<!tpu.dma_semaphore, #tpu.memory_space<semaphore_mem>>)
        %c0_i32_34 = arith.constant 0 : i32
        %55 = arith.addi %c0_i32_34, %43 : i32
        %c1_i32_35 = arith.constant 1 : i32
        %56 = arith.addi %55, %c1_i32_35 : i32
        %57 = arith.index_cast %56 : i32 to index
        %58 = memref.load %arg1[%57] : memref<16xi32, #tpu.memory_space<smem>>
        %c1_i32_36 = arith.constant 1 : i32
        %59 = arith.addi %43, %c1_i32_36 : i32
        %c0_i32_37 = arith.constant 0 : i32
        %c0_i32_38 = arith.constant 0 : i32
        %c0_i32_39 = arith.constant 0 : i32
        %60 = tpu.memref_slice %arg4[%58, %c0_i32_39] : memref<64x128xf32, #tpu.memory_space<any>> -> memref<1x128xf32, #tpu.memory_space<any>>
        %61 = tpu.memref_squeeze %60 : memref<1x128xf32, #tpu.memory_space<any>> -> memref<128xf32, #tpu.memory_space<any>>
        %c0_i32_40 = arith.constant 0 : i32
        %62 = tpu.memref_slice %arg7[%c0_i32_37, %59, %c0_i32_40] : memref<2x16x128xf32, #tpu.memory_space<vmem>> -> memref<1x1x128xf32, #tpu.memory_space<vmem>>
        %63 = tpu.memref_squeeze %62 : memref<1x1x128xf32, #tpu.memory_space<vmem>> -> memref<128xf32, #tpu.memory_space<vmem>>
        %64 = tpu.memref_slice %arg8[%c0_i32_38] : memref<2x!tpu.dma_semaphore, #tpu.memory_space<semaphore_mem>> -> memref<1x!tpu.dma_semaphore, #tpu.memory_space<semaphore_mem>>
        %65 = tpu.memref_squeeze %64 : memref<1x!tpu.dma_semaphore, #tpu.memory_space<semaphore_mem>> -> memref<!tpu.dma_semaphore, #tpu.memory_space<semaphore_mem>>
        tpu.enqueue_dma source(%61 : memref<128xf32, #tpu.memory_space<any>>) target(%63 : memref<128xf32, #tpu.memory_space<vmem>>) target_semaphore(%65 : memref<!tpu.dma_semaphore, #tpu.memory_space<semaphore_mem>>)
        %c0_i32_41 = arith.constant 0 : i32
        %66 = arith.addi %c0_i32_41, %43 : i32
        %c2_i32_42 = arith.constant 2 : i32
        %67 = arith.addi %66, %c2_i32_42 : i32
        %68 = arith.index_cast %67 : i32 to index
        %69 = memref.load %arg1[%68] : memref<16xi32, #tpu.memory_space<smem>>
        %c2_i32_43 = arith.constant 2 : i32
        %70 = arith.addi %43, %c2_i32_43 : i32
        %c0_i32_44 = arith.constant 0 : i32
        %c0_i32_45 = arith.constant 0 : i32
        %c0_i32_46 = arith.constant 0 : i32
        %71 = tpu.memref_slice %arg4[%69, %c0_i32_46] : memref<64x128xf32, #tpu.memory_space<any>> -> memref<1x128xf32, #tpu.memory_space<any>>
        %72 = tpu.memref_squeeze %71 : memref<1x128xf32, #tpu.memory_space<any>> -> memref<128xf32, #tpu.memory_space<any>>
        %c0_i32_47 = arith.constant 0 : i32
        %73 = tpu.memref_slice %arg7[%c0_i32_44, %70, %c0_i32_47] : memref<2x16x128xf32, #tpu.memory_space<vmem>> -> memref<1x1x128xf32, #tpu.memory_space<vmem>>
        %74 = tpu.memref_squeeze %73 : memref<1x1x128xf32, #tpu.memory_space<vmem>> -> memref<128xf32, #tpu.memory_space<vmem>>
        %75 = tpu.memref_slice %arg8[%c0_i32_45] : memref<2x!tpu.dma_semaphore, #tpu.memory_space<semaphore_mem>> -> memref<1x!tpu.dma_semaphore, #tpu.memory_space<semaphore_mem>>
        %76 = tpu.memref_squeeze %75 : memref<1x!tpu.dma_semaphore, #tpu.memory_space<semaphore_mem>> -> memref<!tpu.dma_semaphore, #tpu.memory_space<semaphore_mem>>
        tpu.enqueue_dma source(%72 : memref<128xf32, #tpu.memory_space<any>>) target(%74 : memref<128xf32, #tpu.memory_space<vmem>>) target_semaphore(%76 : memref<!tpu.dma_semaphore, #tpu.memory_space<semaphore_mem>>)
        %c0_i32_48 = arith.constant 0 : i32
        %77 = arith.addi %c0_i32_48, %43 : i32
        %c3_i32 = arith.constant 3 : i32
        %78 = arith.addi %77, %c3_i32 : i32
        %79 = arith.index_cast %78 : i32 to index
        %80 = memref.load %arg1[%79] : memref<16xi32, #tpu.memory_space<smem>>
        %c3_i32_49 = arith.constant 3 : i32
        %81 = arith.addi %43, %c3_i32_49 : i32
        %c0_i32_50 = arith.constant 0 : i32
        %c0_i32_51 = arith.constant 0 : i32
        %c0_i32_52 = arith.constant 0 : i32
        %82 = tpu.memref_slice %arg4[%80, %c0_i32_52] : memref<64x128xf32, #tpu.memory_space<any>> -> memref<1x128xf32, #tpu.memory_space<any>>
        %83 = tpu.memref_squeeze %82 : memref<1x128xf32, #tpu.memory_space<any>> -> memref<128xf32, #tpu.memory_space<any>>
        %c0_i32_53 = arith.constant 0 : i32
        %84 = tpu.memref_slice %arg7[%c0_i32_50, %81, %c0_i32_53] : memref<2x16x128xf32, #tpu.memory_space<vmem>> -> memref<1x1x128xf32, #tpu.memory_space<vmem>>
        %85 = tpu.memref_squeeze %84 : memref<1x1x128xf32, #tpu.memory_space<vmem>> -> memref<128xf32, #tpu.memory_space<vmem>>
        %86 = tpu.memref_slice %arg8[%c0_i32_51] : memref<2x!tpu.dma_semaphore, #tpu.memory_space<semaphore_mem>> -> memref<1x!tpu.dma_semaphore, #tpu.memory_space<semaphore_mem>>
        %87 = tpu.memref_squeeze %86 : memref<1x!tpu.dma_semaphore, #tpu.memory_space<semaphore_mem>> -> memref<!tpu.dma_semaphore, #tpu.memory_space<semaphore_mem>>
        tpu.enqueue_dma source(%83 : memref<128xf32, #tpu.memory_space<any>>) target(%85 : memref<128xf32, #tpu.memory_space<vmem>>) target_semaphore(%87 : memref<!tpu.dma_semaphore, #tpu.memory_space<semaphore_mem>>)
        %c0_i32_54 = arith.constant 0 : i32
        %88 = arith.addi %c0_i32_54, %43 : i32
        %c4_i32 = arith.constant 4 : i32
        %89 = arith.addi %88, %c4_i32 : i32
        %90 = arith.index_cast %89 : i32 to index
        %91 = memref.load %arg1[%90] : memref<16xi32, #tpu.memory_space<smem>>
        %c4_i32_55 = arith.constant 4 : i32
        %92 = arith.addi %43, %c4_i32_55 : i32
        %c0_i32_56 = arith.constant 0 : i32
        %c0_i32_57 = arith.constant 0 : i32
        %c0_i32_58 = arith.constant 0 : i32
        %93 = tpu.memref_slice %arg4[%91, %c0_i32_58] : memref<64x128xf32, #tpu.memory_space<any>> -> memref<1x128xf32, #tpu.memory_space<any>>
        %94 = tpu.memref_squeeze %93 : memref<1x128xf32, #tpu.memory_space<any>> -> memref<128xf32, #tpu.memory_space<any>>
        %c0_i32_59 = arith.constant 0 : i32
        %95 = tpu.memref_slice %arg7[%c0_i32_56, %92, %c0_i32_59] : memref<2x16x128xf32, #tpu.memory_space<vmem>> -> memref<1x1x128xf32, #tpu.memory_space<vmem>>
        %96 = tpu.memref_squeeze %95 : memref<1x1x128xf32, #tpu.memory_space<vmem>> -> memref<128xf32, #tpu.memory_space<vmem>>
        %97 = tpu.memref_slice %arg8[%c0_i32_57] : memref<2x!tpu.dma_semaphore, #tpu.memory_space<semaphore_mem>> -> memref<1x!tpu.dma_semaphore, #tpu.memory_space<semaphore_mem>>
        %98 = tpu.memref_squeeze %97 : memref<1x!tpu.dma_semaphore, #tpu.memory_space<semaphore_mem>> -> memref<!tpu.dma_semaphore, #tpu.memory_space<semaphore_mem>>
        tpu.enqueue_dma source(%94 : memref<128xf32, #tpu.memory_space<any>>) target(%96 : memref<128xf32, #tpu.memory_space<vmem>>) target_semaphore(%98 : memref<!tpu.dma_semaphore, #tpu.memory_space<semaphore_mem>>)
        %c0_i32_60 = arith.constant 0 : i32
        %99 = arith.addi %c0_i32_60, %43 : i32
        %c5_i32 = arith.constant 5 : i32
        %100 = arith.addi %99, %c5_i32 : i32
        %101 = arith.index_cast %100 : i32 to index
        %102 = memref.load %arg1[%101] : memref<16xi32, #tpu.memory_space<smem>>
        %c5_i32_61 = arith.constant 5 : i32
        %103 = arith.addi %43, %c5_i32_61 : i32
        %c0_i32_62 = arith.constant 0 : i32
        %c0_i32_63 = arith.constant 0 : i32
        %c0_i32_64 = arith.constant 0 : i32
        %104 = tpu.memref_slice %arg4[%102, %c0_i32_64] : memref<64x128xf32, #tpu.memory_space<any>> -> memref<1x128xf32, #tpu.memory_space<any>>
        %105 = tpu.memref_squeeze %104 : memref<1x128xf32, #tpu.memory_space<any>> -> memref<128xf32, #tpu.memory_space<any>>
        %c0_i32_65 = arith.constant 0 : i32
        %106 = tpu.memref_slice %arg7[%c0_i32_62, %103, %c0_i32_65] : memref<2x16x128xf32, #tpu.memory_space<vmem>> -> memref<1x1x128xf32, #tpu.memory_space<vmem>>
        %107 = tpu.memref_squeeze %106 : memref<1x1x128xf32, #tpu.memory_space<vmem>> -> memref<128xf32, #tpu.memory_space<vmem>>
        %108 = tpu.memref_slice %arg8[%c0_i32_63] : memref<2x!tpu.dma_semaphore, #tpu.memory_space<semaphore_mem>> -> memref<1x!tpu.dma_semaphore, #tpu.memory_space<semaphore_mem>>
        %109 = tpu.memref_squeeze %108 : memref<1x!tpu.dma_semaphore, #tpu.memory_space<semaphore_mem>> -> memref<!tpu.dma_semaphore, #tpu.memory_space<semaphore_mem>>
        tpu.enqueue_dma source(%105 : memref<128xf32, #tpu.memory_space<any>>) target(%107 : memref<128xf32, #tpu.memory_space<vmem>>) target_semaphore(%109 : memref<!tpu.dma_semaphore, #tpu.memory_space<semaphore_mem>>)
        %c0_i32_66 = arith.constant 0 : i32
        %110 = arith.addi %c0_i32_66, %43 : i32
        %c6_i32 = arith.constant 6 : i32
        %111 = arith.addi %110, %c6_i32 : i32
        %112 = arith.index_cast %111 : i32 to index
        %113 = memref.load %arg1[%112] : memref<16xi32, #tpu.memory_space<smem>>
        %c6_i32_67 = arith.constant 6 : i32
        %114 = arith.addi %43, %c6_i32_67 : i32
        %c0_i32_68 = arith.constant 0 : i32
        %c0_i32_69 = arith.constant 0 : i32
        %c0_i32_70 = arith.constant 0 : i32
        %115 = tpu.memref_slice %arg4[%113, %c0_i32_70] : memref<64x128xf32, #tpu.memory_space<any>> -> memref<1x128xf32, #tpu.memory_space<any>>
        %116 = tpu.memref_squeeze %115 : memref<1x128xf32, #tpu.memory_space<any>> -> memref<128xf32, #tpu.memory_space<any>>
        %c0_i32_71 = arith.constant 0 : i32
        %117 = tpu.memref_slice %arg7[%c0_i32_68, %114, %c0_i32_71] : memref<2x16x128xf32, #tpu.memory_space<vmem>> -> memref<1x1x128xf32, #tpu.memory_space<vmem>>
        %118 = tpu.memref_squeeze %117 : memref<1x1x128xf32, #tpu.memory_space<vmem>> -> memref<128xf32, #tpu.memory_space<vmem>>
        %119 = tpu.memref_slice %arg8[%c0_i32_69] : memref<2x!tpu.dma_semaphore, #tpu.memory_space<semaphore_mem>> -> memref<1x!tpu.dma_semaphore, #tpu.memory_space<semaphore_mem>>
        %120 = tpu.memref_squeeze %119 : memref<1x!tpu.dma_semaphore, #tpu.memory_space<semaphore_mem>> -> memref<!tpu.dma_semaphore, #tpu.memory_space<semaphore_mem>>
        tpu.enqueue_dma source(%116 : memref<128xf32, #tpu.memory_space<any>>) target(%118 : memref<128xf32, #tpu.memory_space<vmem>>) target_semaphore(%120 : memref<!tpu.dma_semaphore, #tpu.memory_space<semaphore_mem>>)
        %c0_i32_72 = arith.constant 0 : i32
        %121 = arith.addi %c0_i32_72, %43 : i32
        %c7_i32 = arith.constant 7 : i32
        %122 = arith.addi %121, %c7_i32 : i32
        %123 = arith.index_cast %122 : i32 to index
        %124 = memref.load %arg1[%123] : memref<16xi32, #tpu.memory_space<smem>>
        %c7_i32_73 = arith.constant 7 : i32
        %125 = arith.addi %43, %c7_i32_73 : i32
        %c0_i32_74 = arith.constant 0 : i32
        %c0_i32_75 = arith.constant 0 : i32
        %c0_i32_76 = arith.constant 0 : i32
        %126 = tpu.memref_slice %arg4[%124, %c0_i32_76] : memref<64x128xf32, #tpu.memory_space<any>> -> memref<1x128xf32, #tpu.memory_space<any>>
        %127 = tpu.memref_squeeze %126 : memref<1x128xf32, #tpu.memory_space<any>> -> memref<128xf32, #tpu.memory_space<any>>
        %c0_i32_77 = arith.constant 0 : i32
        %128 = tpu.memref_slice %arg7[%c0_i32_74, %125, %c0_i32_77] : memref<2x16x128xf32, #tpu.memory_space<vmem>> -> memref<1x1x128xf32, #tpu.memory_space<vmem>>
        %129 = tpu.memref_squeeze %128 : memref<1x1x128xf32, #tpu.memory_space<vmem>> -> memref<128xf32, #tpu.memory_space<vmem>>
        %130 = tpu.memref_slice %arg8[%c0_i32_75] : memref<2x!tpu.dma_semaphore, #tpu.memory_space<semaphore_mem>> -> memref<1x!tpu.dma_semaphore, #tpu.memory_space<semaphore_mem>>
        %131 = tpu.memref_squeeze %130 : memref<1x!tpu.dma_semaphore, #tpu.memory_space<semaphore_mem>> -> memref<!tpu.dma_semaphore, #tpu.memory_space<semaphore_mem>>
        tpu.enqueue_dma source(%127 : memref<128xf32, #tpu.memory_space<any>>) target(%129 : memref<128xf32, #tpu.memory_space<vmem>>) target_semaphore(%131 : memref<!tpu.dma_semaphore, #tpu.memory_space<semaphore_mem>>)
      }
      %c2_i32_24 = arith.constant 2 : i32
    } else {
    }
    %c1_i32_5 = arith.constant 1 : i32
    %13 = arith.addi %arg0, %c1_i32_5 : i32
    %c1_i32_6 = arith.constant 1 : i32
    %14 = arith.cmpi slt, %13, %c1_i32_6 : i32
    %15 = arith.extui %14 : i1 to i32
    %c0_i32_7 = arith.constant 0 : i32
    %16 = arith.cmpi ne, %15, %c0_i32_7 : i32
    scf.if %16 {
      %c1_i32_21 = arith.constant 1 : i32
      %39 = arith.addi %arg0, %c1_i32_21 : i32
      %c1_i32_22 = arith.constant 1 : i32
      %40 = arith.subi %c1_i32_22, %9 : i32
      %c16_i32 = arith.constant 16 : i32
      %41 = arith.muli %39, %c16_i32 : i32
      %c0_i32_23 = arith.constant 0 : i32
      %c2_i32_24 = arith.constant 2 : i32
      %42 = arith.addi %c0_i32_23, %c2_i32_24 : i32
      %c1_i32_25 = arith.constant 1 : i32
      scf.for %arg9 = %c0_i32_23 to %42 step %c1_i32_25  : i32 {
        %c1_i32_27 = arith.constant 1 : i32
        %43 = arith.muli %arg9, %c1_i32_27 : i32
        %c0_i32_28 = arith.constant 0 : i32
        %44 = arith.addi %c0_i32_28, %43 : i32
        %c8_i32 = arith.constant 8 : i32
        %45 = arith.muli %44, %c8_i32 : i32
        %46 = tpu.assume_multiple %45, 8 : i32
        %47 = arith.addi %41, %46 : i32
        %c0_i32_29 = arith.constant 0 : i32
        %48 = arith.addi %47, %c0_i32_29 : i32
        %49 = arith.index_cast %48 : i32 to index
        %50 = memref.load %arg1[%49] : memref<16xi32, #tpu.memory_space<smem>>
        %c0_i32_30 = arith.constant 0 : i32
        %51 = arith.addi %46, %c0_i32_30 : i32
        %c0_i32_31 = arith.constant 0 : i32
        %52 = tpu.memref_slice %arg4[%50, %c0_i32_31] : memref<64x128xf32, #tpu.memory_space<any>> -> memref<1x128xf32, #tpu.memory_space<any>>
        %53 = tpu.memref_squeeze %52 : memref<1x128xf32, #tpu.memory_space<any>> -> memref<128xf32, #tpu.memory_space<any>>
        %c0_i32_32 = arith.constant 0 : i32
        %54 = tpu.memref_slice %arg7[%40, %51, %c0_i32_32] : memref<2x16x128xf32, #tpu.memory_space<vmem>> -> memref<1x1x128xf32, #tpu.memory_space<vmem>>
        %55 = tpu.memref_squeeze %54 : memref<1x1x128xf32, #tpu.memory_space<vmem>> -> memref<128xf32, #tpu.memory_space<vmem>>
        %56 = tpu.memref_slice %arg8[%40] : memref<2x!tpu.dma_semaphore, #tpu.memory_space<semaphore_mem>> -> memref<1x!tpu.dma_semaphore, #tpu.memory_space<semaphore_mem>>
        %57 = tpu.memref_squeeze %56 : memref<1x!tpu.dma_semaphore, #tpu.memory_space<semaphore_mem>> -> memref<!tpu.dma_semaphore, #tpu.memory_space<semaphore_mem>>
        tpu.enqueue_dma source(%53 : memref<128xf32, #tpu.memory_space<any>>) target(%55 : memref<128xf32, #tpu.memory_space<vmem>>) target_semaphore(%57 : memref<!tpu.dma_semaphore, #tpu.memory_space<semaphore_mem>>)
        %58 = arith.addi %41, %46 : i32
        %c1_i32_33 = arith.constant 1 : i32
        %59 = arith.addi %58, %c1_i32_33 : i32
        %60 = arith.index_cast %59 : i32 to index
        %61 = memref.load %arg1[%60] : memref<16xi32, #tpu.memory_space<smem>>
        %c1_i32_34 = arith.constant 1 : i32
        %62 = arith.addi %46, %c1_i32_34 : i32
        %c0_i32_35 = arith.constant 0 : i32
        %63 = tpu.memref_slice %arg4[%61, %c0_i32_35] : memref<64x128xf32, #tpu.memory_space<any>> -> memref<1x128xf32, #tpu.memory_space<any>>
        %64 = tpu.memref_squeeze %63 : memref<1x128xf32, #tpu.memory_space<any>> -> memref<128xf32, #tpu.memory_space<any>>
        %c0_i32_36 = arith.constant 0 : i32
        %65 = tpu.memref_slice %arg7[%40, %62, %c0_i32_36] : memref<2x16x128xf32, #tpu.memory_space<vmem>> -> memref<1x1x128xf32, #tpu.memory_space<vmem>>
        %66 = tpu.memref_squeeze %65 : memref<1x1x128xf32, #tpu.memory_space<vmem>> -> memref<128xf32, #tpu.memory_space<vmem>>
        %67 = tpu.memref_slice %arg8[%40] : memref<2x!tpu.dma_semaphore, #tpu.memory_space<semaphore_mem>> -> memref<1x!tpu.dma_semaphore, #tpu.memory_space<semaphore_mem>>
        %68 = tpu.memref_squeeze %67 : memref<1x!tpu.dma_semaphore, #tpu.memory_space<semaphore_mem>> -> memref<!tpu.dma_semaphore, #tpu.memory_space<semaphore_mem>>
        tpu.enqueue_dma source(%64 : memref<128xf32, #tpu.memory_space<any>>) target(%66 : memref<128xf32, #tpu.memory_space<vmem>>) target_semaphore(%68 : memref<!tpu.dma_semaphore, #tpu.memory_space<semaphore_mem>>)
        %69 = arith.addi %41, %46 : i32
        %c2_i32_37 = arith.constant 2 : i32
        %70 = arith.addi %69, %c2_i32_37 : i32
        %71 = arith.index_cast %70 : i32 to index
        %72 = memref.load %arg1[%71] : memref<16xi32, #tpu.memory_space<smem>>
        %c2_i32_38 = arith.constant 2 : i32
        %73 = arith.addi %46, %c2_i32_38 : i32
        %c0_i32_39 = arith.constant 0 : i32
        %74 = tpu.memref_slice %arg4[%72, %c0_i32_39] : memref<64x128xf32, #tpu.memory_space<any>> -> memref<1x128xf32, #tpu.memory_space<any>>
        %75 = tpu.memref_squeeze %74 : memref<1x128xf32, #tpu.memory_space<any>> -> memref<128xf32, #tpu.memory_space<any>>
        %c0_i32_40 = arith.constant 0 : i32
        %76 = tpu.memref_slice %arg7[%40, %73, %c0_i32_40] : memref<2x16x128xf32, #tpu.memory_space<vmem>> -> memref<1x1x128xf32, #tpu.memory_space<vmem>>
        %77 = tpu.memref_squeeze %76 : memref<1x1x128xf32, #tpu.memory_space<vmem>> -> memref<128xf32, #tpu.memory_space<vmem>>
        %78 = tpu.memref_slice %arg8[%40] : memref<2x!tpu.dma_semaphore, #tpu.memory_space<semaphore_mem>> -> memref<1x!tpu.dma_semaphore, #tpu.memory_space<semaphore_mem>>
        %79 = tpu.memref_squeeze %78 : memref<1x!tpu.dma_semaphore, #tpu.memory_space<semaphore_mem>> -> memref<!tpu.dma_semaphore, #tpu.memory_space<semaphore_mem>>
        tpu.enqueue_dma source(%75 : memref<128xf32, #tpu.memory_space<any>>) target(%77 : memref<128xf32, #tpu.memory_space<vmem>>) target_semaphore(%79 : memref<!tpu.dma_semaphore, #tpu.memory_space<semaphore_mem>>)
        %80 = arith.addi %41, %46 : i32
        %c3_i32 = arith.constant 3 : i32
        %81 = arith.addi %80, %c3_i32 : i32
        %82 = arith.index_cast %81 : i32 to index
        %83 = memref.load %arg1[%82] : memref<16xi32, #tpu.memory_space<smem>>
        %c3_i32_41 = arith.constant 3 : i32
        %84 = arith.addi %46, %c3_i32_41 : i32
        %c0_i32_42 = arith.constant 0 : i32
        %85 = tpu.memref_slice %arg4[%83, %c0_i32_42] : memref<64x128xf32, #tpu.memory_space<any>> -> memref<1x128xf32, #tpu.memory_space<any>>
        %86 = tpu.memref_squeeze %85 : memref<1x128xf32, #tpu.memory_space<any>> -> memref<128xf32, #tpu.memory_space<any>>
        %c0_i32_43 = arith.constant 0 : i32
        %87 = tpu.memref_slice %arg7[%40, %84, %c0_i32_43] : memref<2x16x128xf32, #tpu.memory_space<vmem>> -> memref<1x1x128xf32, #tpu.memory_space<vmem>>
        %88 = tpu.memref_squeeze %87 : memref<1x1x128xf32, #tpu.memory_space<vmem>> -> memref<128xf32, #tpu.memory_space<vmem>>
        %89 = tpu.memref_slice %arg8[%40] : memref<2x!tpu.dma_semaphore, #tpu.memory_space<semaphore_mem>> -> memref<1x!tpu.dma_semaphore, #tpu.memory_space<semaphore_mem>>
        %90 = tpu.memref_squeeze %89 : memref<1x!tpu.dma_semaphore, #tpu.memory_space<semaphore_mem>> -> memref<!tpu.dma_semaphore, #tpu.memory_space<semaphore_mem>>
        tpu.enqueue_dma source(%86 : memref<128xf32, #tpu.memory_space<any>>) target(%88 : memref<128xf32, #tpu.memory_space<vmem>>) target_semaphore(%90 : memref<!tpu.dma_semaphore, #tpu.memory_space<semaphore_mem>>)
        %91 = arith.addi %41, %46 : i32
        %c4_i32 = arith.constant 4 : i32
        %92 = arith.addi %91, %c4_i32 : i32
        %93 = arith.index_cast %92 : i32 to index
        %94 = memref.load %arg1[%93] : memref<16xi32, #tpu.memory_space<smem>>
        %c4_i32_44 = arith.constant 4 : i32
        %95 = arith.addi %46, %c4_i32_44 : i32
        %c0_i32_45 = arith.constant 0 : i32
        %96 = tpu.memref_slice %arg4[%94, %c0_i32_45] : memref<64x128xf32, #tpu.memory_space<any>> -> memref<1x128xf32, #tpu.memory_space<any>>
        %97 = tpu.memref_squeeze %96 : memref<1x128xf32, #tpu.memory_space<any>> -> memref<128xf32, #tpu.memory_space<any>>
        %c0_i32_46 = arith.constant 0 : i32
        %98 = tpu.memref_slice %arg7[%40, %95, %c0_i32_46] : memref<2x16x128xf32, #tpu.memory_space<vmem>> -> memref<1x1x128xf32, #tpu.memory_space<vmem>>
        %99 = tpu.memref_squeeze %98 : memref<1x1x128xf32, #tpu.memory_space<vmem>> -> memref<128xf32, #tpu.memory_space<vmem>>
        %100 = tpu.memref_slice %arg8[%40] : memref<2x!tpu.dma_semaphore, #tpu.memory_space<semaphore_mem>> -> memref<1x!tpu.dma_semaphore, #tpu.memory_space<semaphore_mem>>
        %101 = tpu.memref_squeeze %100 : memref<1x!tpu.dma_semaphore, #tpu.memory_space<semaphore_mem>> -> memref<!tpu.dma_semaphore, #tpu.memory_space<semaphore_mem>>
        tpu.enqueue_dma source(%97 : memref<128xf32, #tpu.memory_space<any>>) target(%99 : memref<128xf32, #tpu.memory_space<vmem>>) target_semaphore(%101 : memref<!tpu.dma_semaphore, #tpu.memory_space<semaphore_mem>>)
        %102 = arith.addi %41, %46 : i32
        %c5_i32 = arith.constant 5 : i32
        %103 = arith.addi %102, %c5_i32 : i32
        %104 = arith.index_cast %103 : i32 to index
        %105 = memref.load %arg1[%104] : memref<16xi32, #tpu.memory_space<smem>>
        %c5_i32_47 = arith.constant 5 : i32
        %106 = arith.addi %46, %c5_i32_47 : i32
        %c0_i32_48 = arith.constant 0 : i32
        %107 = tpu.memref_slice %arg4[%105, %c0_i32_48] : memref<64x128xf32, #tpu.memory_space<any>> -> memref<1x128xf32, #tpu.memory_space<any>>
        %108 = tpu.memref_squeeze %107 : memref<1x128xf32, #tpu.memory_space<any>> -> memref<128xf32, #tpu.memory_space<any>>
        %c0_i32_49 = arith.constant 0 : i32
        %109 = tpu.memref_slice %arg7[%40, %106, %c0_i32_49] : memref<2x16x128xf32, #tpu.memory_space<vmem>> -> memref<1x1x128xf32, #tpu.memory_space<vmem>>
        %110 = tpu.memref_squeeze %109 : memref<1x1x128xf32, #tpu.memory_space<vmem>> -> memref<128xf32, #tpu.memory_space<vmem>>
        %111 = tpu.memref_slice %arg8[%40] : memref<2x!tpu.dma_semaphore, #tpu.memory_space<semaphore_mem>> -> memref<1x!tpu.dma_semaphore, #tpu.memory_space<semaphore_mem>>
        %112 = tpu.memref_squeeze %111 : memref<1x!tpu.dma_semaphore, #tpu.memory_space<semaphore_mem>> -> memref<!tpu.dma_semaphore, #tpu.memory_space<semaphore_mem>>
        tpu.enqueue_dma source(%108 : memref<128xf32, #tpu.memory_space<any>>) target(%110 : memref<128xf32, #tpu.memory_space<vmem>>) target_semaphore(%112 : memref<!tpu.dma_semaphore, #tpu.memory_space<semaphore_mem>>)
        %113 = arith.addi %41, %46 : i32
        %c6_i32 = arith.constant 6 : i32
        %114 = arith.addi %113, %c6_i32 : i32
        %115 = arith.index_cast %114 : i32 to index
        %116 = memref.load %arg1[%115] : memref<16xi32, #tpu.memory_space<smem>>
        %c6_i32_50 = arith.constant 6 : i32
        %117 = arith.addi %46, %c6_i32_50 : i32
        %c0_i32_51 = arith.constant 0 : i32
        %118 = tpu.memref_slice %arg4[%116, %c0_i32_51] : memref<64x128xf32, #tpu.memory_space<any>> -> memref<1x128xf32, #tpu.memory_space<any>>
        %119 = tpu.memref_squeeze %118 : memref<1x128xf32, #tpu.memory_space<any>> -> memref<128xf32, #tpu.memory_space<any>>
        %c0_i32_52 = arith.constant 0 : i32
        %120 = tpu.memref_slice %arg7[%40, %117, %c0_i32_52] : memref<2x16x128xf32, #tpu.memory_space<vmem>> -> memref<1x1x128xf32, #tpu.memory_space<vmem>>
        %121 = tpu.memref_squeeze %120 : memref<1x1x128xf32, #tpu.memory_space<vmem>> -> memref<128xf32, #tpu.memory_space<vmem>>
        %122 = tpu.memref_slice %arg8[%40] : memref<2x!tpu.dma_semaphore, #tpu.memory_space<semaphore_mem>> -> memref<1x!tpu.dma_semaphore, #tpu.memory_space<semaphore_mem>>
        %123 = tpu.memref_squeeze %122 : memref<1x!tpu.dma_semaphore, #tpu.memory_space<semaphore_mem>> -> memref<!tpu.dma_semaphore, #tpu.memory_space<semaphore_mem>>
        tpu.enqueue_dma source(%119 : memref<128xf32, #tpu.memory_space<any>>) target(%121 : memref<128xf32, #tpu.memory_space<vmem>>) target_semaphore(%123 : memref<!tpu.dma_semaphore, #tpu.memory_space<semaphore_mem>>)
        %124 = arith.addi %41, %46 : i32
        %c7_i32 = arith.constant 7 : i32
        %125 = arith.addi %124, %c7_i32 : i32
        %126 = arith.index_cast %125 : i32 to index
        %127 = memref.load %arg1[%126] : memref<16xi32, #tpu.memory_space<smem>>
        %c7_i32_53 = arith.constant 7 : i32
        %128 = arith.addi %46, %c7_i32_53 : i32
        %c0_i32_54 = arith.constant 0 : i32
        %129 = tpu.memref_slice %arg4[%127, %c0_i32_54] : memref<64x128xf32, #tpu.memory_space<any>> -> memref<1x128xf32, #tpu.memory_space<any>>
        %130 = tpu.memref_squeeze %129 : memref<1x128xf32, #tpu.memory_space<any>> -> memref<128xf32, #tpu.memory_space<any>>
        %c0_i32_55 = arith.constant 0 : i32
        %131 = tpu.memref_slice %arg7[%40, %128, %c0_i32_55] : memref<2x16x128xf32, #tpu.memory_space<vmem>> -> memref<1x1x128xf32, #tpu.memory_space<vmem>>
        %132 = tpu.memref_squeeze %131 : memref<1x1x128xf32, #tpu.memory_space<vmem>> -> memref<128xf32, #tpu.memory_space<vmem>>
        %133 = tpu.memref_slice %arg8[%40] : memref<2x!tpu.dma_semaphore, #tpu.memory_space<semaphore_mem>> -> memref<1x!tpu.dma_semaphore, #tpu.memory_space<semaphore_mem>>
        %134 = tpu.memref_squeeze %133 : memref<1x!tpu.dma_semaphore, #tpu.memory_space<semaphore_mem>> -> memref<!tpu.dma_semaphore, #tpu.memory_space<semaphore_mem>>
        tpu.enqueue_dma source(%130 : memref<128xf32, #tpu.memory_space<any>>) target(%132 : memref<128xf32, #tpu.memory_space<vmem>>) target_semaphore(%134 : memref<!tpu.dma_semaphore, #tpu.memory_space<semaphore_mem>>)
      }
      %c2_i32_26 = arith.constant 2 : i32
    } else {
    }
    %17 = tpu.iota {dimensions = array<i32: 1>} : vector<16x64xi32>
    %c0 = arith.constant 0 : index
    %c0_8 = arith.constant 0 : index
    %18 = vector.load %arg2[%c0, %c0_8] : memref<16x1xi32, #tpu.memory_space<vmem>>, vector<16x1xi32>
    %19 = vector.broadcast %18 : vector<16x1xi32> to vector<16x64xi32>
    %20 = arith.cmpi eq, %17, %19 : vector<16x64xi32>
    %c0_9 = arith.constant 0 : index
    %c0_10 = arith.constant 0 : index
    %21 = vector.load %arg3[%c0_9, %c0_10] : memref<16x1xi32, #tpu.memory_space<vmem>>, vector<16x1xi32>
    %22 = vector.broadcast %21 : vector<16x1xi32> to vector<16x64xi32>
    %23 = arith.cmpi eq, %17, %22 : vector<16x64xi32>
    %24 = arith.ori %20, %23 : vector<16x64xi1>
    %25 = arith.extui %24 : vector<16x64xi1> to vector<16x64xi32>
    %26 = arith.sitofp %25 : vector<16x64xi32> to vector<16x64xf32>
    %c0_11 = arith.constant 0 : index
    %c0_12 = arith.constant 0 : index
    %27 = vector.load %arg5[%c0_11, %c0_12] : memref<64x128xf32, #tpu.memory_space<vmem>>, vector<64x128xf32>
    %cst = arith.constant dense<0.000000e+00> : vector<16x128xf32>
    %28 = tpu.matmul %26, %27, %cst {dimension_numbers = #tpu.dot_dimension_numbers<[1], [0], [0], [1], [0, 0, 1, 1], [], []>} : vector<16x64xf32>, vector<64x128xf32>, vector<16x128xf32> -> vector<16x128xf32>
    %c0_i32_13 = arith.constant 0 : i32
    %c0_i32_14 = arith.constant 0 : i32
    %29 = tpu.memref_slice %arg4[%c0_i32_13, %c0_i32_14] : memref<64x128xf32, #tpu.memory_space<any>> -> memref<16x128xf32, #tpu.memory_space<any>>
    %c0_i32_15 = arith.constant 0 : i32
    %c0_i32_16 = arith.constant 0 : i32
    %30 = tpu.memref_slice %arg7[%9, %c0_i32_15, %c0_i32_16] : memref<2x16x128xf32, #tpu.memory_space<vmem>> -> memref<1x16x128xf32, #tpu.memory_space<vmem>>
    %31 = tpu.memref_squeeze %30 : memref<1x16x128xf32, #tpu.memory_space<vmem>> -> memref<16x128xf32, #tpu.memory_space<vmem>>
    %32 = tpu.memref_slice %arg8[%9] : memref<2x!tpu.dma_semaphore, #tpu.memory_space<semaphore_mem>> -> memref<1x!tpu.dma_semaphore, #tpu.memory_space<semaphore_mem>>
    %33 = tpu.memref_squeeze %32 : memref<1x!tpu.dma_semaphore, #tpu.memory_space<semaphore_mem>> -> memref<!tpu.dma_semaphore, #tpu.memory_space<semaphore_mem>>
    tpu.wait_dma2 semaphore(%33 : memref<!tpu.dma_semaphore, #tpu.memory_space<semaphore_mem>>) src(%29 : memref<16x128xf32, #tpu.memory_space<any>>) dst(%31 : memref<16x128xf32, #tpu.memory_space<vmem>>)
    %34 = arith.index_cast %9 : i32 to index
    %c0_17 = arith.constant 0 : index
    %c0_18 = arith.constant 0 : index
    %35 = vector.load %arg7[%34, %c0_17, %c0_18] : memref<2x16x128xf32, #tpu.memory_space<vmem>>, vector<1x16x128xf32>
    %36 = vector.shape_cast %35 : vector<1x16x128xf32> to vector<16x128xf32>
    %37 = arith.addf %36, %28 : vector<16x128xf32>
    %c0_19 = arith.constant 0 : index
    %c0_20 = arith.constant 0 : index
    %38 = vector.load %arg6[%c0_19, %c0_20] : memref<16x128xf32, #tpu.memory_space<vmem>>, vector<16x128xf32>
    tpu.vector_store %arg6[%c0_19, %c0_20], %37 {strides = array<i32>} : memref<16x128xf32, #tpu.memory_space<vmem>>, vector<16x128xf32>,
    return
  }
  func.func @transform_0(%arg0: i32, %arg1: memref<16xi32, #tpu.memory_space<smem>>) -> (i32, i32) {
    %c0_i32 = arith.constant 0 : i32
    %c0_i32_0 = arith.constant 0 : i32
    return %arg0, %c0_i32 : i32, i32
  }
  func.func @transform_1(%arg0: i32, %arg1: memref<16xi32, #tpu.memory_space<smem>>) -> (i32, i32) {
    %c0_i32 = arith.constant 0 : i32
    %c0_i32_0 = arith.constant 0 : i32
    return %arg0, %c0_i32 : i32, i32
  }
  func.func @transform_3(%arg0: i32, %arg1: memref<16xi32, #tpu.memory_space<smem>>) -> (i32, i32) {
    %c0_i32 = arith.constant 0 : i32
    %c0_i32_0 = arith.constant 0 : i32
    %c0_i32_1 = arith.constant 0 : i32
    return %c0_i32, %c0_i32_0 : i32, i32
  }
  func.func @transform_4(%arg0: i32, %arg1: memref<16xi32, #tpu.memory_space<smem>>) -> (i32, i32) {
    %c0_i32 = arith.constant 0 : i32
    %c0_i32_0 = arith.constant 0 : i32
    return %arg0, %c0_i32 : i32, i32
  }
}

</mosaic_0001>

<bundles_post_ra>
// kernel: tpu_custom_call.1
= control target key start
LH: loop header
LB: loop body
LE: loop exit
PB: predicated region body
PF: predicated region fallthrough
CT: control target
= control target key end

     0   :  { %s1239_s0 = inlined_call_operand.vmem [shape: s32[16], index: 0, kind: input, shape index: {}]   ;;  %s1240_s1 = inlined_call_operand.vmem [shape: s32[16,1], index: 1, kind: input, shape index: {}]   ;;  %s1241_s2 = inlined_call_operand.vmem [shape: s32[16,1], index: 2, kind: input, shape index: {}]   ;;  %s1242_s3 = inlined_call_operand.hbm [shape: f32[64,128], index: 3, kind: input, shape index: {}]   ;;  %s1243_s4 = inlined_call_operand.hbm [shape: f32[64,128], index: 4, kind: input, shape index: {}]   ;;  %s1244_s5 = inlined_call_operand.hbm [shape: f32[16,128], index: 5, kind: output, shape index: {}]  }
   0x1   :  { %s10_s20 = sshll.u32 %s1239_s0, 4  ;;  %s11_s20 = int_to_ptr.vmem [resolvable:$true] %s10_s20 }
   0x2   :  { %s741_s21 = scalar_lea.vmem %s11_s20, 16  ;;  %p746_p1 = scmp.lt.s32.totalorder %s11_s20, %s11_s20 }
   0x3   :  { %p742_p0 = scmp.ne.s32.totalorder %s11_s20, %s741_s21  ;;  %p747_p2 = scmp.lt.s32.totalorder %s741_s21, %s741_s21 }
   0x5   :  { %p748_p3 = por %p747_p2, %p746_p1 }
   0x7   :  { %p749_p4 = pnand %p748_p3, %p742_p0 }
   0x9   :  { %752 = shalt.err (!%p749_p4)  }
   0xa   :  { %s1005_s22 = smov [#allocation5]  }
   0xb   :  { %13 = dma.vmem_to_smem %s11_s20, 16, %s1005_s22, [#allocation4] }
   0xc   :  { %993 = dma.done.wait [#allocation4], 16 }
   0xd   :  { %994 = vsyncadd [#allocation4], 4294967280 }
   0xe   :  { %15 = sfence }
   0xf   :  { %16 = vsyncpa [#allocation7], 0 }
  0x10   :  { %17 = vsyncpa [#allocation8], 0  ;;  %s1006_s23 = smov [#allocation6]   ;;  %s753_s26 = scalar_lea.hbm %s1243_s4, 1024 }
  0x11   :  { %s27_s24 = sshll.u32 %s1006_s23, 4  ;;  %p754_p5 = scmp.ne.s32.totalorder %s1243_s4, %s753_s26  ;;  %s28_s24 = int_to_ptr.vmem [resolvable:$true] %s27_s24 }
  0x12   :  { %p757_p6 = scmp.lt.u32.totalorder %s753_s26, %s1243_s4 }
  0x14   :  { %p759_p7 = pnand %p757_p6, %p754_p5 }
  0x16   :  { %762 = shalt.err (!%p759_p7)
}
  0x17   :  { %s763_s6 = scalar_lea.vmem %s28_s24, 1024  ;;  %p768_p9 = scmp.lt.s32.totalorder %s28_s24, %s28_s24 }
  0x18   :  { %p764_p8 = scmp.ne.s32.totalorder %s28_s24, %s763_s6  ;;  %p769_p10 = scmp.lt.s32.totalorder %s763_s6, %s763_s6 }
  0x1a   :  { %p770_p11 = por %p769_p10, %p768_p9 }
  0x1c   :  { %p771_p12 = pnand %p770_p11, %p764_p8 }
  0x1e   :  { %774 = shalt.err (!%p771_p12)
}
  0x1f   :  { %s1007_s7 = smov 128   ;;  %s1008_s8 = smov 8  }
  0x20   :  { %33 = dma.hbm_to_vmem [thread:$0]  %s1243_s4, 1024, %s28_s24, [#allocation7], %s1007_s7, %s1007_s7, %s1008_s8  }
  0x21   :  { %995 = dma.done.wait [#allocation7], 1024  }
  0x22   :  { %996 = vsyncadd [#allocation7], 4294966272  ;;  %s1061_s11 = smov 0  }
  0x23 LB: > { %s1067_s12 = sshll.u32 %s1003_s11, 3  ;;  %s1094_s29 = scalar_lea.hbm %s1242_s3, 1024  ;;  %s1003_s11 = sphi %s1061_s11, %s54_s11  }
  0x24   : > { %s56_s13 = sld [smem:[#allocation5 + %s1067_s12]]  ;;  %s1071_s14 = scalar_lea.vmem [#allocation2], %s1067_s12 }
  0x25   : > { %s67_s4 = sshll.u32 %s1071_s14, 4  ;;  %s71_s15 = sadd.s32 1, %s1067_s12  ;;  %s1075_s4 = int_to_ptr.vmem [resolvable:$true] %s67_s4 }
  0x26   : > { %s1077_s16 = sld [smem:[#allocation5 + %s71_s15]]  ;;  %s510_s17 = scalar_lea.vmem %s1071_s14, 1 [#allocation2] }
  0x27   : > { %s87_s18 = sadd.s32 2, %s1067_s12  ;;  %s83_s19 = sshll.u32 %s510_s17, 4  ;;  %s1083_s19 = int_to_ptr.vmem [resolvable:$true] %s83_s19 }
  0x28   : > { %s1081_s20 = sld [smem:[#allocation5 + %s87_s18]]  ;;  %s515_s21 = scalar_lea.vmem %s1071_s14, 2 [#allocation2] }
  0x29   : > { %s99_s23 = sshll.u32 %s515_s21, 4  ;;  %s1089_s23 = int_to_ptr.vmem [resolvable:$true] %s99_s23 }
  0x2a   : > { %s611_s22 = sshll.u32 %s56_s13, 4 }
  0x2b   : > { %s58_s0 = scalar_lea.hbm %s1242_s3, %s611_s22 }
  0x2c   : > { %s775_s26 = scalar_lea.hbm %s58_s0, 16  ;;  %p778_p0 = scmp.lt.u32.totalorder %s58_s0, %s1242_s3 }
  0x2d   : > { %p776_p13 = scmp.ne.s32.totalorder %s58_s0, %s775_s26  ;;  %p779_p1 = scmp.lt.u32.totalorder %s1094_s29, %s775_s26 }
  0x2e   : > { %p781_p3 = scmp.lt.u32.totalorder %s775_s26, %s58_s0 }
  0x2f   : > { %p780_p2 = por %p779_p1, %p778_p0 }
  0x31   : > { %p782_p4 = por %p781_p3, %p780_p2 }
  0x33   : > { %p783_p5 = pnand %p782_p4, %p776_p13 }
  0x35   : > { %786 = shalt.err (!%p783_p5)  }
  0x36   : > { %s787_s9 = scalar_lea.vmem %s1075_s4, 16  ;;  %s1009_s10 = smov [#allocation2]  }
  0x37   : > { %p788_p6 = scmp.ne.s32.totalorder %s1075_s4, %s787_s9  ;;  %s789_s13 = sshll.u32 %s1009_s10, 4  ;;  %s1102_s13 = int_to_ptr.vmem [resolvable:$false] %s789_s13 }
  0x38   : > { %s1105_s15 = scalar_lea.vmem %s1102_s13, 512  ;;  %p792_p7 = scmp.lt.s32.totalorder %s1075_s4, %s1102_s13 }
  0x39   : > { %p793_p8 = scmp.lt.s32.totalorder %s1105_s15, %s787_s9 }
  0x3b   : > { %p794_p9 = por %p793_p8, %p792_p7 }
  0x3d   : > { %p795_p10 = pnand %p794_p9, %p788_p6 }
  0x3f   : > { %798 = shalt.err (!%p795_p10)  }
  0x40   : > { %70 = dma.hbm_to_vmem [thread:$0]  %s58_s0, 16, %s1075_s4, [#allocation3] }
  0x41   : > { %s612_s17 = sshll.u32 %s1077_s16, 4  ;;  %s103_s18 = sadd.s32 3, %s1067_s12 }
  0x42   : > { %s74_s24 = scalar_lea.hbm %s1242_s3, %s612_s17  ;;  %s614_s25 = sshll.u32 %s1081_s20, 4 }
  0x43   : > { %s799_s26 = scalar_lea.hbm %s74_s24, 16  ;;  %p802_p12 = scmp.lt.u32.totalorder %s74_s24, %s1242_s3 }
  0x44   : > { %p800_p11 = scmp.ne.s32.totalorder %s74_s24, %s799_s26  ;;  %p803_p13 = scmp.lt.u32.totalorder %s1094_s29, %s799_s26 }
  0x45   : > { %p805_p1 = scmp.lt.u32.totalorder %s799_s26, %s74_s24 }
  0x46   : > { %p804_p0 = por %p803_p13, %p802_p12 }
  0x48   : > { %p806_p2 = por %p805_p1, %p804_p0 }
  0x4a   : > { %p807_p3 = pnand %p806_p2, %p800_p11 }
  0x4c   : > { %810 = shalt.err (!%p807_p3)  }
  0x4d   : > { %s811_s4 = scalar_lea.vmem %s1083_s19, 16  ;;  %p816_p5 = scmp.lt.s32.totalorder %s1083_s19, %s1102_s13 }
  0x4e   : > { %p812_p4 = scmp.ne.s32.totalorder %s1083_s19, %s811_s4  ;;  %p817_p6 = scmp.lt.s32.totalorder %s1105_s15, %s811_s4 }
  0x50   : > { %p818_p7 = por %p817_p6, %p816_p5 }
  0x52   : > { %p819_p8 = pnand %p818_p7, %p812_p4 }
  0x54   : > { %822 = shalt.err (!%p819_p8)  }
  0x55   : > { %86 = dma.hbm_to_vmem [thread:$0]  %s74_s24, 16, %s1083_s19, [#allocation3] }
  0x56   : > { %s90_s0 = scalar_lea.hbm %s1242_s3, %s614_s25  ;;  %s1130_s30 = sld [smem:[#allocation5 + %s103_s18]] }
  0x57   : > { %s823_s6 = scalar_lea.hbm %s90_s0, 16  ;;  %p826_p10 = scmp.lt.u32.totalorder %s90_s0, %s1242_s3 }
  0x58   : > { %p824_p9 = scmp.ne.s32.totalorder %s90_s0, %s823_s6  ;;  %p827_p11 = scmp.lt.u32.totalorder %s1094_s29, %s823_s6 }
  0x59   : > { %p829_p13 = scmp.lt.u32.totalorder %s823_s6, %s90_s0 }
  0x5a   : > { %p828_p12 = por %p827_p11, %p826_p10 }
  0x5c   : > { %p830_p0 = por %p829_p13, %p828_p12 }
  0x5e   : > { %p831_p1 = pnand %p830_p0, %p824_p9 }
  0x60   : > { %834 = shalt.err (!%p831_p1)  }
  0x61   : > { %s835_s19 = scalar_lea.vmem %s1089_s23, 16  ;;  %p840_p3 = scmp.lt.s32.totalorder %s1089_s23, %s1102_s13 }
  0x62   : > { %p836_p2 = scmp.ne.s32.totalorder %s1089_s23, %s835_s19  ;;  %p841_p4 = scmp.lt.s32.totalorder %s1105_s15, %s835_s19 }
  0x64   : > { %p842_p5 = por %p841_p4, %p840_p3 }
  0x66   : > { %p843_p6 = pnand %p842_p5, %p836_p2 }
  0x68   : > { %846 = shalt.err (!%p843_p6)  }
  0x69   : > { %102 = dma.hbm_to_vmem [thread:$0]  %s90_s0, 16, %s1089_s23, [#allocation3] }
  0x6a   : > { %s520_s17 = scalar_lea.vmem %s1071_s14, 3 [#allocation2]  ;;  %s119_s18 = sadd.s32 4, %s1067_s12 }
  0x6b   : > { %s115_s21 = sshll.u32 %s520_s17, 4  ;;  %s1144_s22 = sld [smem:[#allocation5 + %s119_s18]]  ;;  %s116_s21 = int_to_ptr.vmem [resolvable:$true] %s115_s21 }
  0x6c   : > { %s525_s24 = scalar_lea.vmem %s1071_s14, 4 [#allocation2]  ;;  %s135_s26 = sadd.s32 5, %s1067_s12 }
  0x6d   : > { %s131_s25 = sshll.u32 %s525_s24, 4  ;;  %s616_s27 = sshll.u32 %s1130_s30, 4  ;;  %s1149_s25 = int_to_ptr.vmem [resolvable:$true] %s131_s25 }
  0x6e   : > { %s106_s16 = scalar_lea.hbm %s1242_s3, %s616_s27  ;;  %s1154_s20 = sld [smem:[#allocation5 + %s135_s26]] }
  0x6f   : > { %s847_s23 = scalar_lea.hbm %s106_s16, 16  ;;  %p850_p8 = scmp.lt.u32.totalorder %s106_s16, %s1242_s3 }
  0x70   : > { %p848_p7 = scmp.ne.s32.totalorder %s106_s16, %s847_s23  ;;  %p851_p9 = scmp.lt.u32.totalorder %s1094_s29, %s847_s23 }
  0x71   : > { %p853_p11 = scmp.lt.u32.totalorder %s847_s23, %s106_s16 }
  0x72   : > { %p852_p10 = por %p851_p9, %p850_p8 }
  0x74   : > { %p854_p12 = por %p853_p11, %p852_p10 }
  0x76   : > { %p855_p13 = pnand %p854_p12, %p848_p7 }
  0x78   : > { %858 = shalt.err (!%p855_p13)  }
  0x79   : > { %s859_s30 = scalar_lea.vmem %s116_s21, 16  ;;  %p864_p1 = scmp.lt.s32.totalorder %s116_s21, %s1102_s13 }
  0x7a   : > { %p860_p0 = scmp.ne.s32.totalorder %s116_s21, %s859_s30  ;;  %p865_p2 = scmp.lt.s32.totalorder %s1105_s15, %s859_s30 }
  0x7c   : > { %p866_p3 = por %p865_p2, %p864_p1 }
  0x7e   : > { %p867_p4 = pnand %p866_p3, %p860_p0 }
  0x80   : > { %870 = shalt.err (!%p867_p4)  }
  0x81   : > { %118 = dma.hbm_to_vmem [thread:$0]  %s106_s16, 16, %s116_s21, [#allocation3] }
  0x82   : > { %s618_s9 = sshll.u32 %s1144_s22, 4  ;;  %s530_s10 = scalar_lea.vmem %s1071_s14, 5 [#allocation2] }
  0x83   : > { %s122_s18 = scalar_lea.hbm %s1242_s3, %s618_s9  ;;  %s147_s24 = sshll.u32 %s530_s10, 4  ;;  %s148_s24 = int_to_ptr.vmem [resolvable:$true] %s147_s24 }
  0x84   : > { %s871_s26 = scalar_lea.hbm %s122_s18, 16  ;;  %p874_p6 = scmp.lt.u32.totalorder %s122_s18, %s1242_s3 }
  0x85   : > { %p872_p5 = scmp.ne.s32.totalorder %s122_s18, %s871_s26  ;;  %p875_p7 = scmp.lt.u32.totalorder %s1094_s29, %s871_s26 }
  0x86   : > { %p877_p9 = scmp.lt.u32.totalorder %s871_s26, %s122_s18 }
  0x87   : > { %p876_p8 = por %p875_p7, %p874_p6 }
  0x89   : > { %p878_p10 = por %p877_p9, %p876_p8 }
  0x8b   : > { %p879_p11 = pnand %p878_p10, %p872_p5 }
  0x8d   : > { %882 = shalt.err (!%p879_p11)  }
  0x8e   : > { %s883_s21 = scalar_lea.vmem %s1149_s25, 16  ;;  %p888_p13 = scmp.lt.s32.totalorder %s1149_s25, %s1102_s13 }
  0x8f   : > { %p884_p12 = scmp.ne.s32.totalorder %s1149_s25, %s883_s21  ;;  %p889_p0 = scmp.lt.s32.totalorder %s1105_s15, %s883_s21 }
  0x91   : > { %p890_p1 = por %p889_p0, %p888_p13 }
  0x93   : > { %p891_p2 = pnand %p890_p1, %p884_p12 }
  0x95   : > { %894 = shalt.err (!%p891_p2)  }
  0x96   : > { %134 = dma.hbm_to_vmem [thread:$0]  %s122_s18, 16, %s1149_s25, [#allocation3] }
  0x97   : > { %s151_s22 = sadd.s32 6, %s1067_s12  ;;  %s620_s4 = sshll.u32 %s1154_s20, 4 }
  0x98   : > { %s152_s16 = sld [smem:[#allocation5 + %s151_s22]]  ;;  %s138_s6 = scalar_lea.hbm %s1242_s3, %s620_s4 }
  0x99   : > { %s535_s30 = scalar_lea.vmem %s1071_s14, 6 [#allocation2]  ;;  %s895_s9 = scalar_lea.hbm %s138_s6, 16 }
  0x9a   : > { %p896_p3 = scmp.ne.s32.totalorder %s138_s6, %s895_s9  ;;  %p898_p4 = scmp.lt.u32.totalorder %s138_s6, %s1242_s3 }
  0x9b   : > { %p899_p5 = scmp.lt.u32.totalorder %s1094_s29, %s895_s9  ;;  %p901_p7 = scmp.lt.u32.totalorder %s895_s9, %s138_s6 }
  0x9d   : > { %p900_p6 = por %p899_p5, %p898_p4 }
  0x9f   : > { %p902_p8 = por %p901_p7, %p900_p6 }
  0xa1   : > { %p903_p9 = pnand %p902_p8, %p896_p3 }
  0xa3   : > { %906 = shalt.err (!%p903_p9)  }
  0xa4   : > { %s907_s25 = scalar_lea.vmem %s148_s24, 16  ;;  %p912_p11 = scmp.lt.s32.totalorder %s148_s24, %s1102_s13 }
  0xa5   : > { %p908_p10 = scmp.ne.s32.totalorder %s148_s24, %s907_s25  ;;  %p913_p12 = scmp.lt.s32.totalorder %s1105_s15, %s907_s25 }
  0xa7   : > { %p914_p13 = por %p913_p12, %p912_p11 }
  0xa9   : > { %p915_p0 = pnand %p914_p13, %p908_p10 }
  0xab   : > { %918 = shalt.err (!%p915_p0)  }
  0xac   : > { %150 = dma.hbm_to_vmem [thread:$0]  %s138_s6, 16, %s148_s24, [#allocation3] }
  0xad   : > { %s163_s20 = sshll.u32 %s535_s30, 4  ;;  %s167_s17 = sadd.s32 7, %s1067_s12  ;;  %s164_s20 = int_to_ptr.vmem [resolvable:$true] %s163_s20 }
  0xae   : > { %s168_s18 = sld [smem:[#allocation5 + %s167_s17]]  ;;  %s540_s26 = scalar_lea.vmem %s1071_s14, 7 [#allocation2] }
  0xaf   : > { %s622_s27 = sshll.u32 %s152_s16, 4  ;;  %s179_s28 = sshll.u32 %s540_s26, 4  ;;  %s180_s28 = int_to_ptr.vmem [resolvable:$true] %s179_s28 }
  0xb0   : > { %s154_s4 = scalar_lea.hbm %s1242_s3, %s622_s27 }
  0xb1   : > { %s919_s23 = scalar_lea.hbm %s154_s4, 16  ;;  %p922_p2 = scmp.lt.u32.totalorder %s154_s4, %s1242_s3 }
  0xb2   : > { %p920_p1 = scmp.ne.s32.totalorder %s154_s4, %s919_s23  ;;  %p923_p3 = scmp.lt.u32.totalorder %s1094_s29, %s919_s23 }
  0xb3   : > { %p925_p5 = scmp.lt.u32.totalorder %s919_s23, %s154_s4 }
  0xb4   : > { %p924_p4 = por %p923_p3, %p922_p2 }
  0xb6   : > { %p926_p6 = por %p925_p5, %p924_p4 }
  0xb8   : > { %p927_p7 = pnand %p926_p6, %p920_p1 }
  0xba   : > { %930 = shalt.err (!%p927_p7)  }
  0xbb   : > { %s931_s12 = scalar_lea.vmem %s164_s20, 16  ;;  %p936_p9 = scmp.lt.s32.totalorder %s164_s20, %s1102_s13 }
  0xbc   : > { %p932_p8 = scmp.ne.s32.totalorder %s164_s20, %s931_s12  ;;  %p937_p10 = scmp.lt.s32.totalorder %s1105_s15, %s931_s12 }
  0xbe   : > { %p938_p11 = por %p937_p10, %p936_p9 }
  0xc0   : > { %p939_p12 = pnand %p938_p11, %p932_p8 }
  0xc2   : > { %942 = shalt.err (!%p939_p12)  }
  0xc3   : > { %166 = dma.hbm_to_vmem [thread:$0]  %s154_s4, 16, %s164_s20, [#allocation3] }
  0xc4   : > { %s624_s14 = sshll.u32 %s168_s18, 4 }
  0xc5   : > { %s170_s6 = scalar_lea.hbm %s1242_s3, %s624_s14 }
  0xc6   : > { %s943_s30 = scalar_lea.hbm %s170_s6, 16  ;;  %p946_p0 = scmp.lt.u32.totalorder %s170_s6, %s1242_s3 }
  0xc7   : > { %p944_p13 = scmp.ne.s32.totalorder %s170_s6, %s943_s30  ;;  %p947_p1 = scmp.lt.u32.totalorder %s1094_s29, %s943_s30 }
  0xc8   : > { %p949_p3 = scmp.lt.u32.totalorder %s943_s30, %s170_s6 }
  0xc9   : > { %p948_p2 = por %p947_p1, %p946_p0 }
  0xcb   : > { %p950_p4 = por %p949_p3, %p948_p2 }
  0xcd   : > { %p951_p5 = pnand %p950_p4, %p944_p13 }
  0xcf   : > { %954 = shalt.err (!%p951_p5)  }
  0xd0   : > { %s955_s25 = scalar_lea.vmem %s180_s28, 16  ;;  %p960_p7 = scmp.lt.s32.totalorder %s180_s28, %s1102_s13 }
  0xd1   : > { %p956_p6 = scmp.ne.s32.totalorder %s180_s28, %s955_s25  ;;  %p961_p8 = scmp.lt.s32.totalorder %s1105_s15, %s955_s25 }
  0xd3   : > { %p962_p9 = por %p961_p8, %p960_p7 }
  0xd5   : > { %p963_p10 = pnand %p962_p9, %p956_p6 }
  0xd7   : > { %966 = shalt.err (!%p963_p10)  }
  0xd8   : > { %182 = dma.hbm_to_vmem [thread:$0]  %s170_s6, 16, %s180_s28, [#allocation3] }
  0xd9   : > { %s54_s11 = sadd.s32 1, %s1003_s11  }
  0xda   : > { %p51_p11 = scmp.ge.s32.totalorder %s54_s11, 2  }
  0xdb   :  { %v345_v0 = vld [vmem:[%s1240_s1 + $0x8] sm:$0xff] (%p51_p11)  ;;  %v344_v1 = vld [vmem:[%s1240_s1] sm:$0xff] (%p51_p11)  ;;  %v1010_v2 = vmov (%p51_p11), 0   ;;  %v372_v7 = vld [vmem:[#allocation6 + $0x10] sm:$0xff] (%p51_p11)  ;;  %v342_v17 = vlaneseq (%p51_p11)  ;;  %vm378_vm5 = vcmask (%p51_p11), 523264   ;;  %v1011_v23 = vmov (%p51_p11), 0.0  }
  0xdc   :  { %53 = sbr.rel (!%p51_p11) target bundleno = 35 (0x23), region = 158  ;;  %740 = vset.pattern.permute.xlu1 (%p51_p11), %v1010_v2  ;;  %739 = vset.pattern.permute.xlu0 (%p51_p11), %v1010_v2  ;;  %v370_v3 = vld [vmem:[#allocation6] sm:$0xff] (%p51_p11)  ;;  %v371_v4 = vld [vmem:[#allocation6 + $0x8] sm:$0xff] (%p51_p11)  ;;  %v373_v8 = vld [vmem:[#allocation6 + $0x18] sm:$0xff] (%p51_p11) }
  0xdd   :  { %350 = vperm.xlu1 (%p51_p11), %740, %v345_v0   ;;  %347 = vperm.xlu0 (%p51_p11), %739, %v344_v1   ;;  %v355_v5 = vld [vmem:[%s1241_s2 + $0x8] sm:$0xff] (%p51_p11)  ;;  %v708_v6 = vpack.c.bf16 (%p51_p11), %v371_v4, %v370_v3  ;;  %v354_v9 = vld [vmem:[%s1241_s2] sm:$0xff] (%p51_p11)  ;;  %v712_v10 = vpack.c.bf16 (%p51_p11), %v373_v8, %v372_v7  ;;  %v376_v14 = vld [vmem:[#allocation6 + $0x30] sm:$0xff] (%p51_p11)  ;;  %v343_v20 = vand.u32 (%p51_p11), 127, %v342_v17 }
  0xde   :  { %v374_v11 = vld [vmem:[#allocation6 + $0x20] sm:$0xff] (%p51_p11)  ;;  %v375_v12 = vld [vmem:[#allocation6 + $0x28] sm:$0xff] (%p51_p11)  ;;  %v377_v15 = vld [vmem:[#allocation6 + $0x38] sm:$0xff] (%p51_p11) }
  0xdf   :  { %709 = vmatprep.subr.bf16.mxu0 (%p51_p11), %v708_v6  ;;  %v716_v13 = vpack.c.bf16 (%p51_p11), %v375_v12, %v374_v11  ;;  %v720_v16 = vpack.c.bf16 (%p51_p11), %v377_v15, %v376_v14 }
  0xe0   :  { %711 = vmatpush3.bf16.msra.mxu0 (%p51_p11), %v708_v6 }
  0xe1   :  { %360 = vperm.xlu1 (%p51_p11), %740, %v355_v5   ;;  %357 = vperm.xlu0 (%p51_p11), %739, %v354_v9  }
  0xe2   :  { %713 = vmatprep.subr.bf16.mxu0 (%p51_p11), %v712_v10 }
  0xe4   :  { %715 = vmatpush3.bf16.msra.mxu0 %v712_v10 }
  0xe5   :  { %717 = vmatprep.subr.bf16.mxu0 %v716_v13 }
  0xe8   :  { %719 = vmatpush3.bf16.msra.mxu0 %v716_v13 }
  0xe9   :  { %721 = vmatprep.subr.bf16.mxu0 %v720_v16 }
  0xec   :  { %723 = vmatpush3.bf16.msra.mxu0 %v720_v16 }
 0x15c   :  { %v351_v18 = vpop.permute.xlu1 %350  ;;  %v348_v19 = vpop.permute.xlu0 %347 }
 0x15d   :  { %vm353_vm0 = vcmp.eq.s32.totalorder %v343_v20, %v351_v18  ;;  %vm352_vm3 = vcmp.eq.s32.totalorder %v343_v20, %v348_v19 }
 0x160   :  { %v361_v21 = vpop.permute.xlu1 %360  ;;  %v358_v22 = vpop.permute.xlu0 %357 }
 0x161   :  { %vm363_vm1 = vcmp.eq.s32.totalorder %v343_v20, %v361_v21  ;;  %vm362_vm2 = vcmp.eq.s32.totalorder %v343_v20, %v358_v22 }
 0x162   :  { %vm365_vm4 = vmor %vm353_vm0, %vm363_vm1 }
 0x163   :  { %vm364_vm6 = vmor %vm352_vm3, %vm362_vm2  ;;  %v651_v24 = vsel %vm365_vm4, 1.0, %v1011_v23 }
 0x164   :  { %v650_v25 = vsel %vm364_vm6, 1.0, %v1011_v23 }
 0x165   :  { %705 = vmatprep.mubr.msk.f32.mxu0 %vm378_vm5, %v650_v25 }
 0x166   :  { %706 = vmatmul.mubr.msk.f32.vlgmr.msra.gmra.mrb[0].mxu0 %vm378_vm5, %v651_v24 }
 0x239   :  { %v707_v26 = vpop.f32.mrb[0].mxu0 }
 0x23a   :  { %v451_v27 = vpop.f32.mrb[1].mxu0 }
 0x23b   :  { %997 = dma.done.wait [#allocation3], 256 }
 0x23c   :  { %998 = vsyncadd [#allocation3], 4294967040  ;;  %s1012_s1 = smov [#allocation9]   ;;  %v466_v28 = vld [vmem:[#allocation2] sm:$0xff]  ;;  %v467_v29 = vld [vmem:[#allocation2 + $0x8] sm:$0xff] }
 0x23d   :  { %s477_s2 = sshll.u32 %s1012_s1, 4  ;;  %v468_v30 = vadd.f32 %v466_v28, %v451_v27  ;;  %v469_v31 = vadd.f32 %v707_v26, %v467_v29  ;;  %s478_s2 = int_to_ptr.vmem [resolvable:$true] %s477_s2 }
 0x23e   :  { %s967_s26 = scalar_lea.vmem %s478_s2, 256  ;;  %p972_p13 = scmp.lt.s32.totalorder %s478_s2, %s478_s2 }
 0x23f   :  { %470 = vst [vmem:[#allocation9] sm:$0xff] %v468_v30  ;;  %471 = vst [vmem:[#allocation9 + $0x8] sm:$0xff] %v469_v31  ;;  %p968_p12 = scmp.ne.s32.totalorder %s478_s2, %s967_s26  ;;  %p973_p0 = scmp.lt.s32.totalorder %s967_s26, %s967_s26 }
 0x241   :  { %p974_p1 = por %p973_p0, %p972_p13 }
 0x243   :  { %p975_p2 = pnand %p974_p1, %p968_p12 }
 0x245   :  { %978 = shalt.err (!%p975_p2)
}
 0x246   :  { %s979_s21 = scalar_lea.hbm %s1244_s5, 256 }
 0x247   :  { %p980_p3 = scmp.ne.s32.totalorder %s1244_s5, %s979_s21  ;;  %p983_p4 = scmp.lt.u32.totalorder %s979_s21, %s1244_s5 }
 0x249   :  { %p985_p5 = pnand %p983_p4, %p980_p3 }
 0x24b   :  { %988 = shalt.err (!%p985_p5)
}
 0x24c   :  { %483 = dma.vmem_to_hbm [thread:$0]  %s478_s2, 256, %s1244_s5, [#allocation8], %s1007_s7, %s1007_s7, %s1008_s8  }
 0x24d   :  { %999 = dma.done.wait [#allocation8], 256  }
 0x24e   :  { %1000 = vsyncadd [#allocation8], 4294967040 }
 0x24f   :  { %487 = vsyncpa [#allocation7], 1 }
 0x250   :  { %488 = vsyncpa [#allocation8], 1 }
 0x251   :  { %489 = vsyncmov [#allocation3] }
 0x254   :  { %s490_s14 = vpop.sfrf %489 }
 0x255   :  { %p654_p6 = scmp.ne.s32.totalorder %s490_s14, 0 }
 0x257   :  { %494 = shalt.err (%p654_p6)  }
 0x258   :  { %496 = vsyncmov [#allocation3 + $0x1] }
 0x25b   :  { %s497_s24 = vpop.sfrf %496 }
 0x25c   :  { %p655_p7 = scmp.ne.s32.totalorder %s497_s24, 0 }
 0x25e   :  { %501 = shalt.err (%p655_p7)  }

</bundles_post_ra>
